<compile_context>
chip_gen: v6e
topology: v6e:2x2x1
jax: 0.10.0
libtpu: 0.0.40
codegen_flags: <defaults>
</compile_context>

<pallas_src>
import functools

import jax
import jax.numpy as jnp
from jax.experimental import pallas as pl
from jax.experimental.pallas import tpu as pltpu


def _focal_loss_kernel(logits_ref, tgt_ref, out_ref, *, gamma, num_classes,
                       rows_per_block, total_rows, mask_tail, mask_targets):
    # logits_ref: (1, C, th, 128) float block (pixels dense on sublanes+lanes)
    # tgt_ref:    (1, 1, th, 128) int block
    # out_ref:    (1, 1, 8, 128)  f32 partial-sum block for this grid step
    t = tgt_ref[0, 0]                                          # (th, 128)

    # Running max over classes: C-1 elementwise maxes on dense vregs.
    m = logits_ref[0, 0].astype(jnp.float32)
    for c in range(1, num_classes):
        m = jnp.maximum(m, logits_ref[0, c].astype(jnp.float32))

    # One unrolled pass over classes: sum(exp(z)) and the target-class pick
    # via `where` (no materialized one-hot, no class iota).
    sumexp = jnp.zeros_like(m)
    z_t = jnp.zeros_like(m)
    exp_t = jnp.zeros_like(m)
    for c in range(num_classes):
        z_c = logits_ref[0, c].astype(jnp.float32) - m
        e_c = jnp.exp(z_c)
        sumexp = sumexp + e_c
        sel = t == c
        z_t = jnp.where(sel, z_c, z_t)
        exp_t = jnp.where(sel, e_c, exp_t)

    ce = jnp.log(sumexp) - z_t                                 # per-pixel CE
    # pt = softmax prob of the target class; reuses exp_t computed above
    # instead of a second exp(-ce). (approx=True is a further EUP trim if a
    # few-ULP relative error is acceptable.)
    pt = exp_t * pl.reciprocal(sumexp, approx=False)
    one_minus_pt = jnp.maximum(1.0 - pt, 0.0)                  # clamp for float gamma

    g = float(gamma)
    if g == int(g) and 0 <= int(g) <= 8:
        w = jnp.ones_like(one_minus_pt)
        for _ in range(int(g)):
            w = w * one_minus_pt                               # unrolled integer power
    else:
        w = one_minus_pt ** jnp.float32(g)

    focal = w * ce

    # Mask padding. Both masks are compile-time constants and skipped when unused:
    #   * rows past the real extent (grid tail block, garbage-padded by Pallas)
    #   * pixels padded in the wrapper (target == -1)
    if mask_tail:
        row = (jax.lax.broadcasted_iota(jnp.int32, focal.shape, 0)
               + pl.program_id(1) * rows_per_block)
        focal = jnp.where(row < total_rows, focal, 0.0)
    if mask_targets:
        focal = jnp.where(t >= 0, focal, 0.0)

    # (th,128) -> (th//8, 8, 128) -> (8,128): pure VALU adds, no cross-lane
    # reduce; the final tiny reduce happens in the wrapper.
    out_ref[0, 0] = jnp.sum(focal.reshape(rows_per_block // 8, 8, 128), axis=0)


def _round_up(x, m):
    return -(-x // m) * m


def _pick_rows_per_block(total_rows, batch, num_classes, in_bytes, tgt_bytes,
                         vmem_budget_bytes):
    """Rows (of 128 pixels) per block, sized from a VMEM budget.

    Resident bytes per row ~= 128 * (2x double-buffered logits+targets input
    blocks + ~8 dense f32 working temporaries live inside the kernel).
    `total_rows` is guaranteed >= 8 by the wrapper.
    """
    per_row = 128 * (2 * (num_classes * in_bytes + tgt_bytes) + 8 * 4)
    th = max(1, vmem_budget_bytes // per_row)
    # Keep at least ~4 total grid steps so double-buffering has work to overlap.
    want_blocks = max(1, -(-4 // batch))
    th = min(th, -(-total_rows // want_blocks))
    th = max(8, (th // 8) * 8)                 # sublane-aligned block rows
    th = min(th, (total_rows // 8) * 8)        # never exceed the array extent
    return th


def focal_loss(inputs_nchw, targets_nhw, alpha=1.0, gamma=2.0,
               vmem_budget_bytes=8 << 20):
    """Focal loss (reduction='mean') for logits [N,C,H,W] and int targets [N,H,W]."""
    N, C, H, W = inputs_nchw.shape
    HW = H * W
    P = N * HW

    logits = inputs_nchw.reshape(N, C, HW)                 # free view, no transpose
    targets = targets_nhw.reshape(N, 1, HW)
    if not jnp.issubdtype(targets.dtype, jnp.integer):
        targets = targets.astype(jnp.int32)
    # Narrow integer target dtypes (int8/int16) are passed through untouched.

    # Pad the pixel axis only when needed: to a multiple of 128 (vreg lanes)
    # and to at least 8 rows of 128 (full sublane block). Padded pixels get
    # target -1 and are masked in-kernel.
    mask_targets = False
    HW_pad = max(_round_up(HW, 128), 8 * 128)
    if HW_pad != HW:
        if not jnp.issubdtype(targets.dtype, jnp.signedinteger):
            targets = targets.astype(jnp.int32)
        logits = jnp.pad(logits, ((0, 0), (0, 0), (0, HW_pad - HW)))
        targets = jnp.pad(targets, ((0, 0), (0, 0), (0, HW_pad - HW)),
                          constant_values=-1)
        mask_targets = True

    R = HW_pad // 128
    logits = logits.reshape(N, C, R, 128)                  # free views of contiguous axis
    targets = targets.reshape(N, 1, R, 128)

    in_bytes = jnp.dtype(logits.dtype).itemsize
    tgt_bytes = jnp.dtype(targets.dtype).itemsize
    th = _pick_rows_per_block(R, N, C, in_bytes, tgt_bytes, vmem_budget_bytes)
    num_r = pl.cdiv(R, th)
    mask_tail = (R % th) != 0                              # tail block masked in-kernel

    kernel = functools.partial(
        _focal_loss_kernel, gamma=float(gamma), num_classes=C,
        rows_per_block=th, total_rows=R,
        mask_tail=mask_tail, mask_targets=mask_targets)

    cost = pl.CostEstimate(
        flops=int(P * (6 * C + 12)),
        transcendentals=int(P * (C + 2)),
        bytes_accessed=int(P * (C * in_bytes + tgt_bytes) + N * num_r * 8 * 128 * 4),
    )

    partials = pl.pallas_call(
        kernel,
        out_shape=jax.ShapeDtypeStruct((N, num_r, 8, 128), jnp.float32),
        grid=(N, num_r),
        in_specs=[
            pl.BlockSpec((1, C, th, 128), lambda n, r: (n, 0, r, 0)),
            pl.BlockSpec((1, 1, th, 128), lambda n, r: (n, 0, r, 0)),
        ],
        out_specs=pl.BlockSpec((1, 1, 8, 128), lambda n, r: (n, r, 0, 0)),
        compiler_params=pltpu.CompilerParams(
            # Every grid step owns its own output block -> fully parallel
            # (v7x megacore can shard; no-op on v5e/v6e).
            dimension_semantics=("parallel", "parallel"),
        ),
        cost_estimate=cost,
    )(logits, targets)

    total = jnp.sum(partials)                              # tiny tree-reduce of partials
    # TODO(synk): scalar alpha only; a per-class alpha vector would need an
    # in-kernel alpha[t] pick (same `where` pattern as the target class).
    return jnp.float32(alpha) * total / jnp.float32(P)


def _focal_loss_ref(inputs_nchw, targets_nhw, alpha=1.0, gamma=2.0):
    """Pure-JAX reference matching F.cross_entropy + focal weighting."""
    N, C, H, W = inputs_nchw.shape
    logits = jnp.transpose(inputs_nchw, (0, 2, 3, 1)).reshape(-1, C).astype(jnp.float32)
    tgt = targets_nhw.reshape(-1)
    logp = jax.nn.log_softmax(logits, axis=-1)
    ce = -jnp.take_along_axis(logp, tgt[:, None], axis=-1)[:, 0]
    pt = jnp.exp(-ce)
    focal = alpha * (1.0 - pt) ** gamma * ce
    return focal.mean()


if __name__ == "__main__":
    key = jax.random.PRNGKey(0)
    k1, k2 = jax.random.split(key)

    # Small segmentation-style shapes: batch=2, classes=4, spatial 16x16.
    N, C, H, W = 2, 4, 16, 16
    inputs = jax.random.normal(k1, (N, C, H, W), dtype=jnp.float32)
    targets = jax.random.randint(k2, (N, H, W), 0, C, dtype=jnp.int32)

    loss = focal_loss(inputs, targets, alpha=1.0, gamma=2.0)
    loss = jax.block_until_ready(loss)

    ref = _focal_loss_ref(inputs, targets, alpha=1.0, gamma=2.0)
    assert jnp.allclose(loss, ref, rtol=1e-5, atol=1e-6), (loss, ref)

    print("KERNEL_OK")
</pallas_src>

<mosaic_0001>
module attributes {stable_mosaic.version = 11 : i64} {
  func.func @_focal_loss_kernel(%arg0: i32, %arg1: i32, %arg2: memref<1x4x8x128xf32, #tpu.memory_space<vmem>>, %arg3: memref<1x1x8x128xi32, #tpu.memory_space<vmem>>, %arg4: memref<1x1x8x128xf32, #tpu.memory_space<vmem>>) attributes {dimension_semantics = [#tpu.dimension_semantics<parallel>, #tpu.dimension_semantics<parallel>], iteration_bounds = array<i64: 2, 1>, scalar_prefetch = 0 : i64, scratch_operands = 0 : i64, tpu.core_type = #tpu.core_type<tc>, window_params = [{transform_indices = @transform_0, window_bounds = array<i64: 1, 4, 8, 128>}, {transform_indices = @transform_1, window_bounds = array<i64: 1, 1, 8, 128>}, {transform_indices = @transform_2, window_bounds = array<i64: 1, 1, 8, 128>}]} {
    %c0 = arith.constant 0 : index
    %c0_0 = arith.constant 0 : index
    %c0_1 = arith.constant 0 : index
    %c0_2 = arith.constant 0 : index
    %0 = vector.load %arg3[%c0, %c0_0, %c0_1, %c0_2] : memref<1x1x8x128xi32, #tpu.memory_space<vmem>>, vector<1x1x8x128xi32>
    %1 = vector.shape_cast %0 : vector<1x1x8x128xi32> to vector<8x128xi32>
    %c0_3 = arith.constant 0 : index
    %c0_4 = arith.constant 0 : index
    %c0_5 = arith.constant 0 : index
    %c0_6 = arith.constant 0 : index
    %2 = vector.load %arg2[%c0_3, %c0_4, %c0_5, %c0_6] : memref<1x4x8x128xf32, #tpu.memory_space<vmem>>, vector<1x1x8x128xf32>
    %3 = vector.shape_cast %2 : vector<1x1x8x128xf32> to vector<8x128xf32>
    %c0_7 = arith.constant 0 : index
    %c1 = arith.constant 1 : index
    %c0_8 = arith.constant 0 : index
    %c0_9 = arith.constant 0 : index
    %4 = vector.load %arg2[%c0_7, %c1, %c0_8, %c0_9] : memref<1x4x8x128xf32, #tpu.memory_space<vmem>>, vector<1x1x8x128xf32>
    %5 = vector.shape_cast %4 : vector<1x1x8x128xf32> to vector<8x128xf32>
    %6 = arith.maximumf %3, %5 : vector<8x128xf32>
    %c0_10 = arith.constant 0 : index
    %c2 = arith.constant 2 : index
    %c0_11 = arith.constant 0 : index
    %c0_12 = arith.constant 0 : index
    %7 = vector.load %arg2[%c0_10, %c2, %c0_11, %c0_12] : memref<1x4x8x128xf32, #tpu.memory_space<vmem>>, vector<1x1x8x128xf32>
    %8 = vector.shape_cast %7 : vector<1x1x8x128xf32> to vector<8x128xf32>
    %9 = arith.maximumf %6, %8 : vector<8x128xf32>
    %c0_13 = arith.constant 0 : index
    %c3 = arith.constant 3 : index
    %c0_14 = arith.constant 0 : index
    %c0_15 = arith.constant 0 : index
    %10 = vector.load %arg2[%c0_13, %c3, %c0_14, %c0_15] : memref<1x4x8x128xf32, #tpu.memory_space<vmem>>, vector<1x1x8x128xf32>
    %11 = vector.shape_cast %10 : vector<1x1x8x128xf32> to vector<8x128xf32>
    %12 = arith.maximumf %9, %11 : vector<8x128xf32>
    %cst = arith.constant 0.000000e+00 : f32
    %13 = vector.broadcast %cst : f32 to vector<8x128xf32>
    %cst_16 = arith.constant 0.000000e+00 : f32
    %14 = vector.broadcast %cst_16 : f32 to vector<8x128xf32>
    %cst_17 = arith.constant 0.000000e+00 : f32
    %15 = vector.broadcast %cst_17 : f32 to vector<8x128xf32>
    %c0_18 = arith.constant 0 : index
    %c0_19 = arith.constant 0 : index
    %c0_20 = arith.constant 0 : index
    %c0_21 = arith.constant 0 : index
    %16 = vector.load %arg2[%c0_18, %c0_19, %c0_20, %c0_21] : memref<1x4x8x128xf32, #tpu.memory_space<vmem>>, vector<1x1x8x128xf32>
    %17 = vector.shape_cast %16 : vector<1x1x8x128xf32> to vector<8x128xf32>
    %18 = arith.subf %17, %12 : vector<8x128xf32>
    %19 = math.exp %18 : vector<8x128xf32>
    %20 = arith.addf %13, %19 : vector<8x128xf32>
    %c0_i32 = arith.constant 0 : i32
    %21 = vector.broadcast %c0_i32 : i32 to vector<8x128xi32>
    %22 = arith.cmpi eq, %1, %21 : vector<8x128xi32>
    %23 = arith.select %22, %18, %14 : vector<8x128xi1>, vector<8x128xf32>
    %24 = arith.select %22, %19, %15 : vector<8x128xi1>, vector<8x128xf32>
    %c0_22 = arith.constant 0 : index
    %c1_23 = arith.constant 1 : index
    %c0_24 = arith.constant 0 : index
    %c0_25 = arith.constant 0 : index
    %25 = vector.load %arg2[%c0_22, %c1_23, %c0_24, %c0_25] : memref<1x4x8x128xf32, #tpu.memory_space<vmem>>, vector<1x1x8x128xf32>
    %26 = vector.shape_cast %25 : vector<1x1x8x128xf32> to vector<8x128xf32>
    %27 = arith.subf %26, %12 : vector<8x128xf32>
    %28 = math.exp %27 : vector<8x128xf32>
    %29 = arith.addf %20, %28 : vector<8x128xf32>
    %c1_i32 = arith.constant 1 : i32
    %30 = vector.broadcast %c1_i32 : i32 to vector<8x128xi32>
    %31 = arith.cmpi eq, %1, %30 : vector<8x128xi32>
    %32 = arith.select %31, %27, %23 : vector<8x128xi1>, vector<8x128xf32>
    %33 = arith.select %31, %28, %24 : vector<8x128xi1>, vector<8x128xf32>
    %c0_26 = arith.constant 0 : index
    %c2_27 = arith.constant 2 : index
    %c0_28 = arith.constant 0 : index
    %c0_29 = arith.constant 0 : index
    %34 = vector.load %arg2[%c0_26, %c2_27, %c0_28, %c0_29] : memref<1x4x8x128xf32, #tpu.memory_space<vmem>>, vector<1x1x8x128xf32>
    %35 = vector.shape_cast %34 : vector<1x1x8x128xf32> to vector<8x128xf32>
    %36 = arith.subf %35, %12 : vector<8x128xf32>
    %37 = math.exp %36 : vector<8x128xf32>
    %38 = arith.addf %29, %37 : vector<8x128xf32>
    %c2_i32 = arith.constant 2 : i32
    %39 = vector.broadcast %c2_i32 : i32 to vector<8x128xi32>
    %40 = arith.cmpi eq, %1, %39 : vector<8x128xi32>
    %41 = arith.select %40, %36, %32 : vector<8x128xi1>, vector<8x128xf32>
    %42 = arith.select %40, %37, %33 : vector<8x128xi1>, vector<8x128xf32>
    %c0_30 = arith.constant 0 : index
    %c3_31 = arith.constant 3 : index
    %c0_32 = arith.constant 0 : index
    %c0_33 = arith.constant 0 : index
    %43 = vector.load %arg2[%c0_30, %c3_31, %c0_32, %c0_33] : memref<1x4x8x128xf32, #tpu.memory_space<vmem>>, vector<1x1x8x128xf32>
    %44 = vector.shape_cast %43 : vector<1x1x8x128xf32> to vector<8x128xf32>
    %45 = arith.subf %44, %12 : vector<8x128xf32>
    %46 = math.exp %45 : vector<8x128xf32>
    %47 = arith.addf %38, %46 : vector<8x128xf32>
    %c3_i32 = arith.constant 3 : i32
    %48 = vector.broadcast %c3_i32 : i32 to vector<8x128xi32>
    %49 = arith.cmpi eq, %1, %48 : vector<8x128xi32>
    %50 = arith.select %49, %45, %41 : vector<8x128xi1>, vector<8x128xf32>
    %51 = arith.select %49, %46, %42 : vector<8x128xi1>, vector<8x128xf32>
    %52 = math.log %47 : vector<8x128xf32>
    %53 = arith.subf %52, %50 : vector<8x128xf32>
    %54 = tpu.reciprocal %47 : vector<8x128xf32> -> vector<8x128xf32>
    %55 = arith.mulf %51, %54 : vector<8x128xf32>
    %cst_34 = arith.constant 1.000000e+00 : f32
    %56 = vector.broadcast %cst_34 : f32 to vector<8x128xf32>
    %57 = arith.subf %56, %55 : vector<8x128xf32>
    %cst_35 = arith.constant 0.000000e+00 : f32
    %58 = vector.broadcast %cst_35 : f32 to vector<8x128xf32>
    %59 = arith.maximumf %57, %58 : vector<8x128xf32>
    %cst_36 = arith.constant 1.000000e+00 : f32
    %60 = vector.broadcast %cst_36 : f32 to vector<8x128xf32>
    %61 = arith.mulf %60, %59 : vector<8x128xf32>
    %62 = arith.mulf %61, %59 : vector<8x128xf32>
    %63 = arith.mulf %62, %53 : vector<8x128xf32>
    %c0_i32_37 = arith.constant 0 : i32
    %64 = vector.broadcast %c0_i32_37 : i32 to vector<8x128xi32>
    %65 = arith.cmpi sge, %1, %64 : vector<8x128xi32>
    %cst_38 = arith.constant 0.000000e+00 : f32
    %66 = vector.broadcast %cst_38 : f32 to vector<8x128xf32>
    %67 = arith.select %65, %63, %66 : vector<8x128xi1>, vector<8x128xf32>
    %68 = vector.shape_cast %67 : vector<8x128xf32> to vector<1x8x128xf32>
    %cst_39 = arith.constant dense<0.000000e+00> : vector<8x128xf32>
    %69 = vector.multi_reduction <add>, %68, %cst_39 [0] : vector<1x8x128xf32> to vector<8x128xf32>
    %c0_40 = arith.constant 0 : index
    %c0_41 = arith.constant 0 : index
    %c0_42 = arith.constant 0 : index
    %c0_43 = arith.constant 0 : index
    %70 = vector.load %arg4[%c0_40, %c0_41, %c0_42, %c0_43] : memref<1x1x8x128xf32, #tpu.memory_space<vmem>>, vector<1x1x8x128xf32>
    %71 = vector.shape_cast %70 : vector<1x1x8x128xf32> to vector<8x128xf32>
    %72 = vector.shape_cast %69 : vector<8x128xf32> to vector<1x1x8x128xf32>
    tpu.vector_store %arg4[%c0_40, %c0_41, %c0_42, %c0_43], %72 {strides = array<i32>} : memref<1x1x8x128xf32, #tpu.memory_space<vmem>>, vector<1x1x8x128xf32>,
    return
  }
  func.func @transform_0(%arg0: i32, %arg1: i32) -> (i32, i32, i32, i32) {
    %c0_i32 = arith.constant 0 : i32
    %c0_i32_0 = arith.constant 0 : i32
    %c0_i32_1 = arith.constant 0 : i32
    return %arg0, %c0_i32, %arg1, %c0_i32_0 : i32, i32, i32, i32
  }
  func.func @transform_1(%arg0: i32, %arg1: i32) -> (i32, i32, i32, i32) {
    %c0_i32 = arith.constant 0 : i32
    %c0_i32_0 = arith.constant 0 : i32
    %c0_i32_1 = arith.constant 0 : i32
    return %arg0, %c0_i32, %arg1, %c0_i32_0 : i32, i32, i32, i32
  }
  func.func @transform_2(%arg0: i32, %arg1: i32) -> (i32, i32, i32, i32) {
    %c0_i32 = arith.constant 0 : i32
    %c0_i32_0 = arith.constant 0 : i32
    %c0_i32_1 = arith.constant 0 : i32
    return %arg0, %arg1, %c0_i32, %c0_i32_0 : i32, i32, i32, i32
  }
}

</mosaic_0001>

<bundles_post_ra>
// kernel: tpu_custom_call.1
= control target key start
LH: loop header
LB: loop body
LE: loop exit
PB: predicated region body
PF: predicated region fallthrough
CT: control target
= control target key end

     0   :  { %7 = vsyncpa [#allocation3], 0  ;;  %s827_s0 = inlined_call_operand.hbm [shape: f32[2,4,8,128], index: 0, kind: input, shape index: {}]   ;;  %s828_s1 = inlined_call_operand.hbm [shape: s32[2,1,8,128], index: 1, kind: input, shape index: {}]   ;;  %s829_s2 = inlined_call_operand.hbm [shape: f32[2,1,8,128], index: 2, kind: output, shape index: {}]  }
   0x1   :  { %9 = vsyncpa [#allocation3 + $0x1], 0 }
   0x2   :  { %10 = vsyncpa [#allocation6], 0 }
   0x3   :  { %12 = vsyncpa [#allocation6 + $0x1], 0 }
   0x4   :  { %13 = vsyncpa [#allocation4], 0 }
   0x5   :  { %15 = vsyncpa [#allocation4 + $0x1], 0  ;;  %s655_s9 = smov 0   ;;  %s657_s10 = smov 0  }
   0x6   :  { %s659_s11 = smov 0   ;;  %s661_s12 = smov 0  }
   0x7   :  { %s663_s13 = smov 0   ;;  %s665_s14 = smov 0  }
   0x8 LB: > { %s391_s15 = sadd.s32 4294967295, %s633_s14   ;;  %s392_s16 = sadd.s32 4294967294, %s633_s14   ;;  %s633_s14 = sphi %s665_s14, %s21_s14   ;;  %s629_s13 = sphi %s663_s13, %s841_s13   ;;  %s625_s12 = sphi %s661_s12, %s840_s12   ;;  %s621_s11 = sphi %s659_s11, %s839_s11   ;;  %s617_s10 = sphi %s657_s10, %s838_s10   ;;  %s613_s9 = sphi %s655_s9, %s837_s9  }
   0x9   : > { %s33_s17 = sadd.s32 1, %s629_s13  ;;  %s42_s18 = sadd.s32 1, %s621_s11 }
   0xa   : > { %p35_p0 = scmp.ge.s32.totalorder %s33_s17, 2  ;;  %p49_p1 = scmp.ne.s32.totalorder %s621_s11, %s617_s10 }
   0xb   : > { %p50_p2 = scmp.eq.s32.totalorder %s633_s14, 0  ;;  %p55_p3 = scmp.ne.s32.totalorder %s617_s10, %s613_s9 }
   0xc   : > { %s843_s17 = smov (%p35_p0, %s33_s17), 0  ;;  %p56_p5 = scmp.eq.s32.totalorder %s391_s15, 0 }
   0xd   : > { %p696_p4 = por %p50_p2, %p49_p1  ;;  %s37_s20 = ssub.s32 %s629_s13, %s843_s17 }
   0xe   : > { %p109_p6 = scmp.eq.s32.totalorder %s391_s15, 1  ;;  %p40_p7 = scmp.eq.s32.totalorder %s37_s20, 0 }
   0xf   : > { %p702_p8 = por %p56_p5, %p55_p3  ;;  %p115_p10 = scmp.eq.s32.totalorder %s392_s16, 1 }
  0x10   : > { %p706_p9 = por %p109_p6, %p49_p1  ;;  %p429_p13 = scmp.lt.s32.totalorder %s633_s14, 2 }
  0x11   : > { %s711_s23 = scalar_select %p40_p7, %s621_s11, %s42_s18  }
  0x12   : > { %p713_p11 = por %p115_p10, %p55_p3  ;;  %s720_s25 = sand.u32 1, %s621_s11  }
  0x13   : > { %s395_s26 = sshll.u32 %s720_s25, 5  ;;  %s411_s27 = sshll.u32 %s629_s13, 9 }
  0x14   : > { %s146_s30 = scalar_lea.hbm %s827_s0, %s411_s27  ;;  %s139_s3 = scalar_lea.vmem [#allocation2], %s395_s26 }
  0x15   : > { %s147_s4 = sshll.u32 %s139_s3, 4  ;;  %p729_p0 = pnand %p429_p13, %p696_p4  ;;  %s148_s4 = int_to_ptr.vmem [resolvable:$true] %s147_s4 }
  0x16   : > { %p400_p1 = scmp.ge.s32.totalorder %s633_s14, 1  ;;  %s136_s6 = scalar_lea.sflag [#allocation3], %s720_s25 }
  0x17   : > { %p495_p2 = pneg %p729_p0  ;;  %s506_s7 = scalar_lea.vmem %s148_s4, 512 }
  0x18   : > { %p507_p3 = scmp.ne.s32.totalorder %s148_s4, %s506_s7  ;;  %s635_s8 = smov [#allocation2]  }
  0x19   : > { %s511_s15 = sshll.u32 %s635_s8, 4  ;;  %s512_s15 = int_to_ptr.vmem [resolvable:$false] %s511_s15 }
  0x1a   : > { %p509_p5 = pnand %p507_p3, %p495_p2  ;;  %s513_s16 = scalar_lea.vmem %s512_s15, 1024 }
  0x1b   : > { %p514_p4 = scmp.lt.s32.totalorder %s148_s4, %s512_s15  ;;  %p515_p7 = scmp.lt.s32.totalorder %s513_s16, %s506_s7 }
  0x1c   : > { %p510_p6 = pneg %p509_p5 }
  0x1d   : > { %p516_p10 = por %p515_p7, %p514_p4 }
  0x1f   : > { %p517_p13 = pnand %p516_p10, %p510_p6 }
  0x21   : > { %520 = shalt.err (!%p517_p13)
}
  0x22   : > { %s636_s18 = smov 128   ;;  %s637_s19 = smov 8  }
  0x23   : > { %421 = dma.hbm_to_vmem [thread:$0]  (!%p729_p0), %s146_s30, 512, %s148_s4, %s136_s6, %s636_s18, %s636_s18, %s637_s19  }
  0x24   : > { %p174_p3 = scmp.lt.s32.totalorder %s633_s14, 3  ;;  %s398_s20 = sshll.u32 %s720_s25, 3 }
  0x25   : > { %s399_s26 = sshll.u32 %s629_s13, 7  ;;  %s161_s7 = scalar_lea.vmem [#allocation5], %s398_s20 }
  0x26   : > { %p747_p5 = pnand %p400_p1, %p174_p3  ;;  %s167_s3 = scalar_lea.hbm %s828_s1, %s399_s26 }
  0x27   : > { %s169_s8 = sshll.u32 %s161_s7, 4  ;;  %s158_s15 = scalar_lea.sflag [#allocation6], %s720_s25  ;;  %s170_s8 = int_to_ptr.vmem [resolvable:$true] %s169_s8 }
  0x28   : > { %s534_s16 = scalar_lea.vmem %s170_s8, 128  ;;  %s638_s30 = smov [#allocation5]  }
  0x29   : > { %p535_p6 = scmp.ne.s32.totalorder %s170_s8, %s534_s16  ;;  %s539_s4 = sshll.u32 %s638_s30, 4  ;;  %s540_s4 = int_to_ptr.vmem [resolvable:$false] %s539_s4 }
  0x2a   : > { %s541_s6 = scalar_lea.vmem %s540_s4, 256  ;;  %p542_p1 = scmp.lt.s32.totalorder %s170_s8, %s540_s4 }
  0x2b   : > { %p537_p4 = pnand %p535_p6, %p495_p2  ;;  %p543_p10 = scmp.lt.s32.totalorder %s541_s6, %s534_s16 }
  0x2d   : > { %p538_p7 = pneg %p537_p4  ;;  %p544_p13 = por %p543_p10, %p542_p1 }
  0x2f   : > { %p545_p3 = pnand %p544_p13, %p538_p7 }
  0x31   : > { %548 = shalt.err (!%p545_p3)
}
  0x32   : > { %424 = dma.hbm_to_vmem [thread:$0]  (!%p729_p0), %s167_s3, 128, %s170_s8, %s158_s15  }
  0x33   : > { %178 = sbr.rel (%p747_p5) target bundleno = 131 (0x83), region = 28  ;;  %s763_s25 = sand.u32 (!%p747_p5), 1, %s617_s10  }
  0x34   : > { %s401_s18 = sshll.u32 (!%p747_p5), %s763_s25, 5  ;;  %s181_s19 = scalar_lea.sflag (!%p747_p5), [#allocation3], %s763_s25 }
  0x35   : > { %s184_s20 = scalar_lea.vmem (!%p747_p5), [#allocation2], %s401_s18 }
  0x38   : > { %600 = dma.done.wait (%p702_p8), %s181_s19, 512  }
  0x39   : > { %602 = vsyncadd (%p702_p8), %s181_s19, 4294966784  ;;  %s402_s5 = sshll.u32 %s763_s25, 3  ;;  %s190_s26 = scalar_lea.sflag [#allocation6], %s763_s25 }
  0x3a   : > { %s193_s27 = scalar_lea.vmem [#allocation5], %s402_s5 }
  0x3b   : > { %604 = dma.done.wait (%p702_p8), %s190_s26, 128  }
  0x3c   : > { %606 = vsyncadd (%p702_p8), %s190_s26, 4294967168  ;;  %v220_v0 = vld [vmem:[%s184_s20] sm:$0xff]  ;;  %v404_v1 = vld [vmem:[%s184_s20 + $0x8] sm:$0xff]  ;;  %s218_s21 = scalar_lea.vmem [#allocation7], %s402_s5  ;;  %s408_s29 = sshll.u32 %s625_s12, 7 }
  0x3d   : > { %v223_v2 = vmax.f32 %v220_v0, %v404_v1  ;;  %v405_v3 = vld [vmem:[%s184_s20 + $0x10] sm:$0xff]  ;;  %v406_v4 = vld [vmem:[%s184_s20 + $0x18] sm:$0xff]  ;;  %v219_v21 = vld [vmem:[%s193_s27] sm:$0xff]  ;;  %s286_s28 = sshll.u32 %s218_s21, 4  ;;  %s284_s8 = scalar_lea.hbm %s829_s2, %s408_s29  ;;  %s782_s28 = int_to_ptr.vmem [resolvable:$true] %s286_s28 }
  0x3e   : > { %vm234_vm0 = vcmp.eq.s32.totalorder %v219_v21, 0  ;;  %vm241_vm1 = vcmp.eq.s32.totalorder %v219_v21, 1  ;;  %vm248_vm2 = vcmp.eq.s32.totalorder %v219_v21, 2  ;;  %vm255_vm3 = vcmp.eq.s32.totalorder %v219_v21, 3  ;;  %s272_s15 = scalar_lea.sflag [#allocation4], %s763_s25  ;;  %s549_s16 = scalar_lea.vmem %s782_s28, 128 }
  0x3f   : > { %v226_v5 = vmax.f32 %v223_v2, %v405_v3  ;;  %vm267_vm4 = vcmp.ge.s32.totalorder %v219_v21, 0  ;;  %p550_p8 = scmp.ne.s32.totalorder %s782_s28, %s549_s16  ;;  %s639_s12 = smov [#allocation7]  }
  0x40   : > { %s553_s30 = sshll.u32 %s639_s12, 4  ;;  %s554_s30 = int_to_ptr.vmem [resolvable:$false] %s553_s30 }
  0x41   : > { %v229_v6 = vmax.f32 %v226_v5, %v406_v4  ;;  %p551_p0 = pnand %p550_p8, %p706_p9  ;;  %s555_s4 = scalar_lea.vmem %s554_s30, 256 }
  0x42   : > { %p556_p5 = scmp.lt.s32.totalorder %s782_s28, %s554_s30  ;;  %p557_p6 = scmp.lt.s32.totalorder %s555_s4, %s549_s16 }
  0x43   : > { %v230_v7 = vsub.f32 %v220_v0, %v229_v6  ;;  %v237_v8 = vsub.f32 %v404_v1, %v229_v6  ;;  %v244_v9 = vsub.f32 %v405_v3, %v229_v6  ;;  %v251_v10 = vsub.f32 %v406_v4, %v229_v6  ;;  %p552_p2 = pneg %p551_p0 }
  0x44   : > { %p558_p4 = por %p557_p6, %p556_p5 }
  0x45   : > { %v231_v11 = vmul.f32 1.442695, %v230_v7  ;;  %v238_v12 = vmul.f32 1.442695, %v237_v8  ;;  %v245_v13 = vmul.f32 1.442695, %v244_v9 }
  0x46   : > { %v252_v14 = vmul.f32 1.442695, %v251_v10  ;;  %v235_v25 = vsel %vm234_vm0, %v230_v7, 0.0  ;;  %p559_p7 = pnand %p558_p4, %p552_p2 }
  0x47   : > { %481 = vpow2.f32 %v231_v11  ;;  %v242_v27 = vsel %vm241_vm1, %v237_v8, %v235_v25 }
  0x48   : > { %483 = vpow2.f32 %v238_v12  ;;  %v249_v30 = vsel %vm248_vm2, %v244_v9, %v242_v27 }
  0x49   : > { %485 = vpow2.f32 %v245_v13  ;;  %v256_v34 = vsel %vm255_vm3, %v251_v10, %v249_v30 }
  0x4a   : > { %487 = vpow2.f32 %v252_v14 }
  0x54   : > { %v482_v15 = vpop.eup %481 }
  0x55   : > { %v484_v16 = vpop.eup %483  ;;  %v236_v23 = vsel %vm234_vm0, %v482_v15, 0.0 }
  0x56   : > { %v486_v17 = vpop.eup %485  ;;  %v240_v18 = vadd.f32 %v484_v16, %v482_v15  ;;  %v243_v24 = vsel %vm241_vm1, %v484_v16, %v236_v23 }
  0x57   : > { %v488_v19 = vpop.eup %487  ;;  %v250_v26 = vsel %vm248_vm2, %v486_v17, %v243_v24 }
  0x58   : > { %v247_v20 = vadd.f32 %v486_v17, %v240_v18  ;;  %v257_v28 = vsel %vm255_vm3, %v488_v19, %v250_v26 }
  0x5a   : > { %v254_v22 = vadd.f32 %v488_v19, %v247_v20 }
  0x5c   : > { %489 = vlog2.f32 %v254_v22 }
  0x5d   : > { %491 = vrcp.f32 %v254_v22 }
  0x69   : > { %v490_v29 = vpop.eup %489 }
  0x6a   : > { %v492_v31 = vpop.eup %491  ;;  %v259_v32 = vmul.f32 0.6931472, %v490_v29 }
  0x6b   : > { %v262_v33 = vmul.f32 %v492_v31, %v257_v28 }
  0x6c   : > { %v260_v36 = vsub.f32 %v259_v32, %v256_v34 }
  0x6d   : > { %v263_v35 = vsub.f32 1.0, %v262_v33 }
  0x6f   : > { %v264_v37 = vmax.f32 %v263_v35, 0.0 }
  0x71   : > { %v265_v38 = vmul.f32 %v264_v37, %v264_v37 }
  0x73   : > { %v266_v39 = vmul.f32 %v265_v38, %v260_v36 }
  0x75   : > { %v268_v40 = vsel %vm267_vm4, %v266_v39, 0.0 }
  0x76   : > { %270 = vst [vmem:[%s218_s21] sm:$0xff] %v268_v40 }
  0x77   : > { %562 = shalt.err (!%p559_p7)
}
  0x78   : > { %s563_s6 = scalar_lea.hbm %s284_s8, 128  ;;  %s567_s19 = scalar_lea.hbm %s829_s2, 256 }
  0x79   : > { %p564_p1 = scmp.ne.s32.totalorder %s284_s8, %s563_s6  ;;  %p568_p3 = scmp.lt.s32.totalorder %s284_s8, %s829_s2 }
  0x7a   : > { %p569_p8 = scmp.lt.s32.totalorder %s567_s19, %s563_s6 }
  0x7b   : > { %p565_p10 = pnand %p564_p1, %p706_p9 }
  0x7c   : > { %p570_p0 = por %p569_p8, %p568_p3 }
  0x7d   : > { %p566_p13 = pneg %p565_p10 }
  0x7f   : > { %p571_p12 = pnand %p570_p0, %p566_p13 }
  0x81   : > { %574 = shalt.err (!%p571_p12)
}
  0x82   : > { %416 = dma.vmem_to_hbm [thread:$0]  (%p706_p9), %s782_s28, 128, %s284_s8, %s272_s15  }
  0x83 PF: > { %s298_s26 = sand.u32 1, %s613_s9   ;;  %p836_p2 = scmp.ge.s32.totalorder %s633_s14, 2 }
  0x84   : > { %s299_s27 = scalar_lea.sflag [#allocation4], %s298_s26 }
  0x85   : > { %p426_p5 = pnand %p836_p2, %p713_p11 }
  0x87   : > { %p427_p6 = pneg %p426_p5 }
  0x89   : > { %608 = dma.done.wait (%p427_p6), %s299_s27, 128  }
  0x8a   : > { %610 = vsyncadd (%p427_p6), %s299_s27, 4294967168  ;;  %s21_s14 = sadd.s32 1, %s633_s14   ;;  %s837_s9 = smov %s617_s10 }
  0x8b   : > { %p18_p4 = scmp.ge.s32.totalorder %s21_s14, 4   ;;  %s838_s10 = smov %s621_s11 }
  0x8c   : > { %s839_s11 = smov %s711_s23  ;;  %s840_s12 = smov %s629_s13 }
  0x8d   : > { %s841_s13 = smov %s843_s17  ;;  %20 = sbr.rel (!%p18_p4) target bundleno = 8 (0x8), region = 89 }
  0x92   :  { %304 = vsyncpa [#allocation3], 1 }
  0x93   :  { %306 = vsyncpa [#allocation3 + $0x1], 1 }
  0x94   :  { %307 = vsyncpa [#allocation6], 1 }
  0x95   :  { %309 = vsyncpa [#allocation6 + $0x1], 1 }
  0x96   :  { %310 = vsyncpa [#allocation4], 1 }
  0x97   :  { %312 = vsyncpa [#allocation4 + $0x1], 1 }

</bundles_post_ra>
